<compile_context>
chip_gen: v7x
topology: tpu7x:2x2x1
jax: 0.10.0
libtpu: 0.0.40
codegen_flags: <defaults>
</compile_context>

<pallas_src>
import functools

import jax
import jax.numpy as jnp
from jax.experimental import pallas as pl
from jax.experimental.pallas import tpu as pltpu

# TODO(synk): the HuggingFace AutoModel backbone (self.plm) has no clean Pallas
# equivalent; its pooler_output is taken as the kernel input instead.


def _round_up(x, m):
    return ((x + m - 1) // m) * m


def _loss_kernel(x_ref, w_ref, b_ref, y_ref, loss_ref, *, b_true, o_true):
    """Accumulates MultiLabelSoftMarginLoss over batch tiles into an SMEM scalar."""
    i = pl.program_id(0)
    tb = x_ref.shape[0]

    @pl.when(i == 0)
    def _init():
        loss_ref[0] = jnp.float32(0.0)

    # [TB, H] x [O_pad, H] (contract on H) -> [TB, O_pad], f32 accumulate on MXU.
    logits = jax.lax.dot_general(
        x_ref[...], w_ref[...],
        dimension_numbers=(((1,), (1,)), ((), ())),
        preferred_element_type=jnp.float32,
    ) + b_ref[...].astype(jnp.float32)

    y = y_ref[...].astype(jnp.float32)
    # per-element loss, algebraically fused to a single softplus:
    #   -(y*log σ(z) + (1-y)*log σ(-z)) == softplus(-z) + (1-y)*z
    elem = jnp.logaddexp(0.0, -logits) + (1.0 - y) * logits

    # Mask out padded rows (batch) and padded columns (classes).
    row = jax.lax.broadcasted_iota(jnp.int32, elem.shape, 0) + i * tb
    col = jax.lax.broadcasted_iota(jnp.int32, elem.shape, 1)
    valid = (row < b_true) & (col < o_true)
    loss_ref[0] += jnp.sum(jnp.where(valid, elem, 0.0))

    @pl.when(i == pl.num_programs(0) - 1)
    def _finalize():
        # mean over classes then batch == mean over all real elements
        loss_ref[0] *= jnp.float32(1.0 / (b_true * o_true))


def _pred_kernel(x_ref, w_ref, b_ref, o_ref):
    """(sigmoid(final(x)) > 0.5).float()  ==  (final(x) > 0).float()"""
    logits = jax.lax.dot_general(
        x_ref[...], w_ref[...],
        dimension_numbers=(((1,), (1,)), ((), ())),
        preferred_element_type=jnp.float32,
    ) + b_ref[...].astype(jnp.float32)
    o_ref[...] = (logits > 0.0).astype(o_ref.dtype)


def baseline_forward(hid_texts, weight, bias, labels=None, in_train=False):
    """Pallas implementation of baseline.forward (post-PLM part).

    hid_texts: [B, H]  -- stand-in for plm(...).pooler_output
    weight:    [O, H]  -- nn.Linear(plm_hidden_dim, out_dim).weight
    bias:      [O]     -- nn.Linear bias
    labels:    [B, O]  -- multi-hot labels (only used if in_train)
    """
    B, H = hid_texts.shape
    O = weight.shape[0]

    # Lane-dense class dim; sublane-aligned / tiled batch dim.
    O_pad = _round_up(O, 128)
    if B <= 128:
        TB = _round_up(B, 8)
        B_pad = TB
    else:
        TB = 128
        B_pad = _round_up(B, 128)
    grid = (B_pad // TB,)

    x_p = jnp.pad(hid_texts, ((0, B_pad - B), (0, 0)))
    w_p = jnp.pad(weight, ((0, O_pad - O), (0, 0)))
    b_p = jnp.pad(bias.reshape(1, O), ((0, 0), (0, O_pad - O)))

    x_spec = pl.BlockSpec((TB, H), lambda i: (i, 0))
    w_spec = pl.BlockSpec((O_pad, H), lambda i: (0, 0))   # resident across the grid
    b_spec = pl.BlockSpec((1, O_pad), lambda i: (0, 0))   # resident across the grid

    if in_train:
        assert labels is not None
        y_p = jnp.pad(labels.astype(jnp.float32), ((0, B_pad - B), (0, O_pad - O)))
        loss = pl.pallas_call(
            functools.partial(_loss_kernel, b_true=B, o_true=O),
            out_shape=jax.ShapeDtypeStruct((1,), jnp.float32),
            grid=grid,
            in_specs=[x_spec, w_spec, b_spec,
                      pl.BlockSpec((TB, O_pad), lambda i: (i, 0))],
            out_specs=pl.BlockSpec(memory_space=pltpu.MemorySpace.SMEM),
            compiler_params=pltpu.CompilerParams(
                dimension_semantics=("arbitrary",)),
        )(x_p, w_p, b_p, y_p)
        return loss[0]

    pred = pl.pallas_call(
        _pred_kernel,
        out_shape=jax.ShapeDtypeStruct((B_pad, O_pad), jnp.float32),
        grid=grid,
        in_specs=[x_spec, w_spec, b_spec],
        out_specs=pl.BlockSpec((TB, O_pad), lambda i: (i, 0)),
        compiler_params=pltpu.CompilerParams(
            dimension_semantics=("parallel",)),
    )(x_p, w_p, b_p)
    return pred[:B, :O]


if __name__ == "__main__":
    # Small shapes consistent with the module: batch=2, plm_hidden_dim=32, out_dim=8
    B, H, O = 2, 32, 8

    key = jax.random.PRNGKey(0)
    k_x, k_w, k_b, k_y = jax.random.split(key, 4)

    hid_texts = jax.random.normal(k_x, (B, H), dtype=jnp.float32)
    weight = jax.random.normal(k_w, (O, H), dtype=jnp.float32) * (1.0 / jnp.sqrt(H))
    bias = jax.random.normal(k_b, (O,), dtype=jnp.float32) * 0.01
    labels = (jax.random.uniform(k_y, (B, O)) > 0.5).astype(jnp.float32)

    # Training branch: scalar MultiLabelSoftMarginLoss
    loss = baseline_forward(hid_texts, weight, bias, labels=labels, in_train=True)
    loss = jax.block_until_ready(loss)

    # Inference branch: hard multi-label predictions
    pred = baseline_forward(hid_texts, weight, bias, in_train=False)
    pred = jax.block_until_ready(pred)

    # Reference check in plain JAX
    logits_ref = hid_texts @ weight.T + bias
    log_sig = lambda z: -jnp.logaddexp(0.0, -z)
    loss_ref = jnp.mean(-(labels * log_sig(logits_ref)
                          + (1.0 - labels) * log_sig(-logits_ref)))
    pred_ref = (jax.nn.sigmoid(logits_ref) > 0.5).astype(jnp.float32)

    assert jnp.allclose(loss, loss_ref, rtol=1e-5, atol=1e-5), (loss, loss_ref)
    assert jnp.array_equal(pred, pred_ref), (pred, pred_ref)

    print("KERNEL_OK")
</pallas_src>

<mosaic_0001>
module attributes {stable_mosaic.version = 11 : i64} {
  func.func @_loss_kernel(%arg0: i32, %arg1: memref<8x32xf32, #tpu.memory_space<vmem>>, %arg2: memref<128x32xf32, #tpu.memory_space<vmem>>, %arg3: memref<1x128xf32, #tpu.memory_space<vmem>>, %arg4: memref<8x128xf32, #tpu.memory_space<vmem>>, %arg5: memref<1xf32, #tpu.memory_space<smem>>) attributes {dimension_semantics = [#tpu.dimension_semantics<arbitrary>], iteration_bounds = array<i64: 1>, scalar_prefetch = 0 : i64, scratch_operands = 0 : i64, tpu.core_type = #tpu.core_type<tc>, window_params = [{transform_indices = @transform_0, window_bounds = array<i64: 8, 32>}, {pipeline_mode = #tpu.pipeline_mode<synchronous>, transform_indices = @transform_1, window_bounds = array<i64: 128, 32>}, {pipeline_mode = #tpu.pipeline_mode<synchronous>, transform_indices = @transform_2, window_bounds = array<i64: 1, 128>}, {transform_indices = @transform_3, window_bounds = array<i64: 8, 128>}, {transform_indices = @transform_4, window_bounds = array<i64: 1>}]} {
    %c0_i32 = arith.constant 0 : i32
    %0 = arith.cmpi eq, %arg0, %c0_i32 : i32
    %1 = arith.extui %0 : i1 to i32
    %c0_i32_0 = arith.constant 0 : i32
    %2 = arith.cmpi ne, %1, %c0_i32_0 : i32
    scf.if %2 {
      %cst_19 = arith.constant 0.000000e+00 : f32
      %c0_20 = arith.constant 0 : index
      %52 = memref.load %arg5[%c0_20] : memref<1xf32, #tpu.memory_space<smem>>
      memref.store %cst_19, %arg5[%c0_20] : memref<1xf32, #tpu.memory_space<smem>>
    } else {
    }
    %c0 = arith.constant 0 : index
    %c0_1 = arith.constant 0 : index
    %3 = vector.load %arg1[%c0, %c0_1] : memref<8x32xf32, #tpu.memory_space<vmem>>, vector<8x32xf32>
    %c0_2 = arith.constant 0 : index
    %c0_3 = arith.constant 0 : index
    %4 = vector.load %arg2[%c0_2, %c0_3] : memref<128x32xf32, #tpu.memory_space<vmem>>, vector<128x32xf32>
    %cst = arith.constant dense<0.000000e+00> : vector<8x128xf32>
    %5 = tpu.matmul %3, %4, %cst {dimension_numbers = #tpu.dot_dimension_numbers<[1], [1], [0], [0], [0, 0, 1, 0], [], []>} : vector<8x32xf32>, vector<128x32xf32>, vector<8x128xf32> -> vector<8x128xf32>
    %c0_4 = arith.constant 0 : index
    %c0_5 = arith.constant 0 : index
    %6 = vector.load %arg3[%c0_4, %c0_5] : memref<1x128xf32, #tpu.memory_space<vmem>>, vector<1x128xf32>
    %7 = vector.broadcast %6 : vector<1x128xf32> to vector<8x128xf32>
    %8 = arith.addf %5, %7 : vector<8x128xf32>
    %c0_6 = arith.constant 0 : index
    %c0_7 = arith.constant 0 : index
    %9 = vector.load %arg4[%c0_6, %c0_7] : memref<8x128xf32, #tpu.memory_space<vmem>>, vector<8x128xf32>
    %cst_8 = arith.constant 0.000000e+00 : f32
    %10 = vector.broadcast %cst_8 : f32 to vector<8x128xf32>
    %11 = arith.subf %10, %8 : vector<8x128xf32>
    %cst_9 = arith.constant 0.000000e+00 : f32
    %12 = vector.broadcast %cst_9 : f32 to vector<8x128xf32>
    %13 = arith.maximumf %12, %11 : vector<8x128xf32>
    %14 = vector.broadcast %cst_9 : f32 to vector<8x128xf32>
    %15 = arith.subf %14, %11 : vector<8x128xf32>
    %16 = arith.cmpf one, %15, %15 : vector<8x128xf32>
    %17 = vector.broadcast %cst_9 : f32 to vector<8x128xf32>
    %18 = arith.addf %17, %11 : vector<8x128xf32>
    %19 = math.absf %15 : vector<8x128xf32>
    %cst_10 = arith.constant 0.000000e+00 : f32
    %20 = vector.broadcast %cst_10 : f32 to vector<8x128xf32>
    %21 = arith.subf %20, %19 : vector<8x128xf32>
    %22 = math.exp %21 : vector<8x128xf32>
    %23 = math.log1p %22 : vector<8x128xf32>
    %24 = arith.addf %13, %23 : vector<8x128xf32>
    %25 = arith.select %16, %18, %24 : vector<8x128xi1>, vector<8x128xf32>
    %cst_11 = arith.constant 1.000000e+00 : f32
    %26 = vector.broadcast %cst_11 : f32 to vector<8x128xf32>
    %27 = arith.subf %26, %9 : vector<8x128xf32>
    %28 = arith.mulf %27, %8 : vector<8x128xf32>
    %29 = arith.addf %25, %28 : vector<8x128xf32>
    %30 = tpu.iota {dimensions = array<i32: 0>} : vector<8x128xi32>
    %c8_i32 = arith.constant 8 : i32
    %31 = arith.muli %arg0, %c8_i32 : i32
    %32 = vector.broadcast %31 : i32 to vector<8x128xi32>
    %33 = arith.addi %30, %32 : vector<8x128xi32>
    %34 = tpu.iota {dimensions = array<i32: 1>} : vector<8x128xi32>
    %c2_i32 = arith.constant 2 : i32
    %35 = vector.broadcast %c2_i32 : i32 to vector<8x128xi32>
    %36 = arith.cmpi slt, %33, %35 : vector<8x128xi32>
    %c8_i32_12 = arith.constant 8 : i32
    %37 = vector.broadcast %c8_i32_12 : i32 to vector<8x128xi32>
    %38 = arith.cmpi slt, %34, %37 : vector<8x128xi32>
    %39 = arith.andi %36, %38 : vector<8x128xi1>
    %c0_13 = arith.constant 0 : index
    %40 = memref.load %arg5[%c0_13] : memref<1xf32, #tpu.memory_space<smem>>
    %cst_14 = arith.constant 0.000000e+00 : f32
    %41 = vector.broadcast %cst_14 : f32 to vector<8x128xf32>
    %42 = arith.select %39, %29, %41 : vector<8x128xi1>, vector<8x128xf32>
    %43 = vector.shape_cast %42 : vector<8x128xf32> to vector<1x8x128xf32>
    %cst_15 = arith.constant dense<0.000000e+00> : vector<1xf32>
    %44 = vector.multi_reduction <add>, %43, %cst_15 [1, 2] : vector<1x8x128xf32> to vector<1xf32>
    %45 = vector.shape_cast %44 : vector<1xf32> to vector<1x1x1xf32>
    %46 = vector.extract %45[0, 0, 0] : f32 from vector<1x1x1xf32>
    %47 = arith.addf %40, %46 : f32
    %c0_16 = arith.constant 0 : index
    %48 = memref.load %arg5[%c0_16] : memref<1xf32, #tpu.memory_space<smem>>
    memref.store %47, %arg5[%c0_16] : memref<1xf32, #tpu.memory_space<smem>>
    %c0_i32_17 = arith.constant 0 : i32
    %49 = arith.cmpi eq, %arg0, %c0_i32_17 : i32
    %50 = arith.extui %49 : i1 to i32
    %c0_i32_18 = arith.constant 0 : i32
    %51 = arith.cmpi ne, %50, %c0_i32_18 : i32
    scf.if %51 {
      %c0_19 = arith.constant 0 : index
      %52 = memref.load %arg5[%c0_19] : memref<1xf32, #tpu.memory_space<smem>>
      %cst_20 = arith.constant 6.250000e-02 : f32
      %53 = arith.mulf %52, %cst_20 : f32
      %c0_21 = arith.constant 0 : index
      %54 = memref.load %arg5[%c0_21] : memref<1xf32, #tpu.memory_space<smem>>
      memref.store %53, %arg5[%c0_21] : memref<1xf32, #tpu.memory_space<smem>>
    } else {
    }
    return
  }
  func.func @transform_0(%arg0: i32) -> (i32, i32) {
    %c0_i32 = arith.constant 0 : i32
    %c0_i32_0 = arith.constant 0 : i32
    return %arg0, %c0_i32 : i32, i32
  }
  func.func @transform_1(%arg0: i32) -> (i32, i32) {
    %c0_i32 = arith.constant 0 : i32
    %c0_i32_0 = arith.constant 0 : i32
    %c0_i32_1 = arith.constant 0 : i32
    return %c0_i32, %c0_i32_0 : i32, i32
  }
  func.func @transform_2(%arg0: i32) -> (i32, i32) {
    %c0_i32 = arith.constant 0 : i32
    %c0_i32_0 = arith.constant 0 : i32
    %c0_i32_1 = arith.constant 0 : i32
    return %c0_i32, %c0_i32_0 : i32, i32
  }
  func.func @transform_3(%arg0: i32) -> (i32, i32) {
    %c0_i32 = arith.constant 0 : i32
    %c0_i32_0 = arith.constant 0 : i32
    return %arg0, %c0_i32 : i32, i32
  }
  func.func @transform_4(%arg0: i32) -> i32 {
    %c0_i32 = arith.constant 0 : i32
    %c0_i32_0 = arith.constant 0 : i32
    return %c0_i32 : i32
  }
}

</mosaic_0001>

<bundles_post_ra>
// kernel: tpu_custom_call.1
= control target key start
LH: loop header
LB: loop body
LE: loop exit
PB: predicated region body
PF: predicated region fallthrough
CT: control target
= control target key end

     0   :  { %vm48_vm0 = vcmask 261120   ;;  %v362_v2 = vmov 0.0|0.0   ;;  %vm363_vm2 = vmmov 0   ;;  %v364_v5 = vmov 0.0   ;;  %s483_s0 = inlined_call_operand.vmem [shape: f32[8,32], index: 0, kind: input, shape index: {}]   ;;  %s484_s1 = inlined_call_operand.vmem [shape: f32[128,32], index: 1, kind: input, shape index: {}]   ;;  %s485_s2 = inlined_call_operand.vmem [shape: f32[1,128], index: 2, kind: input, shape index: {}]   ;;  %s486_s3 = inlined_call_operand.vmem [shape: f32[8,128], index: 3, kind: input, shape index: {}]   ;;  %s487_s4 = inlined_call_operand.hbm [shape: f32[1], index: 4, kind: output, shape index: {}]  }
   0x1   :  { %v25_v0 = vld [vmem:[%s484_s1] sm:$0xff]  ;;  %v26_v1 = vld [vmem:[%s484_s1 + $0x8] sm:$0xff]  ;;  %307 = vmatprep.subr.bf16.mxu0 %v362_v2  ;;  %vm399_vm1 = vmpackc.low %vm48_vm0, %vm48_vm0  ;;  %304 = vmatprep.mubr.msk.f32.mxu0 %vm363_vm2, %v364_v5 }
   0x2   :  { %v308_v3 = vpack.c.bf16 %v26_v1, %v25_v0  ;;  %v27_v6 = vld [vmem:[%s484_s1 + $0x10] sm:$0xff]  ;;  %v28_v7 = vld [vmem:[%s484_s1 + $0x18] sm:$0xff] }
   0x4   :  { %310 = vmatpush3.bf16.xpose.msk.msra.mxu0 %vm399_vm1, %v308_v3 }
   0x5   :  { %311 = vmatprep.subr.bf16.mxu0 %v362_v2 }
   0x6   :  { %9 = vsyncpa [#allocation3], 0  ;;  %v312_v8 = vpack.c.bf16 %v28_v7, %v27_v6  ;;  %v29_v9 = vld [vmem:[%s484_s1 + $0x20] sm:$0xff]  ;;  %v30_v10 = vld [vmem:[%s484_s1 + $0x28] sm:$0xff]  ;;  %v194_v40 = vlaneseq  ;;  %s350_s27 = scalar_lea.hbm %s487_s4, 16 }
   0x7   :  { %v316_v11 = vpack.c.bf16 %v30_v10, %v29_v9  ;;  %v31_v12 = vld [vmem:[%s484_s1 + $0x30] sm:$0xff]  ;;  %v32_v13 = vld [vmem:[%s484_s1 + $0x38] sm:$0xff]  ;;  %v33_v15 = vld [vmem:[%s484_s1 + $0x40] sm:$0xff]  ;;  %p351_p0 = scmp.ne.s32.totalorder %s487_s4, %s350_s27  ;;  %p354_p1 = scmp.lt.u32.totalorder %s350_s27, %s487_s4 }
   0x8   :  { %v320_v14 = vpack.c.bf16 %v32_v13, %v31_v12  ;;  %v34_v16 = vld [vmem:[%s484_s1 + $0x48] sm:$0xff]  ;;  %v35_v18 = vld [vmem:[%s484_s1 + $0x50] sm:$0xff]  ;;  %v36_v19 = vld [vmem:[%s484_s1 + $0x58] sm:$0xff]  ;;  %v195_v44 = vshrl.u32 %v194_v40, 7  ;;  %v200_v45 = vand.u32 127, %v194_v40 }
   0x9   :  { %v324_v17 = vpack.c.bf16 %v34_v16, %v33_v15  ;;  %v328_v20 = vpack.c.bf16 %v36_v19, %v35_v18  ;;  %v37_v21 = vld [vmem:[%s484_s1 + $0x60] sm:$0xff]  ;;  %v38_v22 = vld [vmem:[%s484_s1 + $0x68] sm:$0xff]  ;;  %v39_v24 = vld [vmem:[%s484_s1 + $0x70] sm:$0xff]  ;;  %p356_p2 = pnand %p354_p1, %p351_p0 }
   0xa   :  { %v332_v23 = vpack.c.bf16 %v38_v22, %v37_v21  ;;  %v40_v25 = vld [vmem:[%s484_s1 + $0x78] sm:$0xff]  ;;  %v24_v27 = vld [vmem:[%s483_s0] sm:$0xff]  ;;  %vm201_vm4 = vcmp.lt.s32.totalorder %v195_v44, 2  ;;  %vm202_vm5 = vcmp.lt.s32.totalorder %v200_v45, 8 }
   0xb   :  { %v336_v26 = vpack.c.bf16 %v40_v25, %v39_v24  ;;  %v237_v28 = vld [vmem:[%s485_s2] ss:$0 sm:$0xff]  ;;  %vm203_vm7 = vmand %vm201_vm4, %vm202_vm5 }
   0xc   :  { %314 = vmatpush3.bf16.xpose.msk.msra.mxu0 %vm399_vm1, %v312_v8  ;;  %v170_v42 = vld [vmem:[%s486_s3] sm:$0xff] }
   0xd   :  { %315 = vmatprep.subr.bf16.mxu0 %v362_v2  ;;  %v191_v47 = vsub.f32 1.0, %v170_v42 }
  0x14   :  { %318 = vmatpush3.bf16.xpose.msk.msra.mxu0 %vm399_vm1, %v316_v11 }
  0x15   :  { %319 = vmatprep.subr.bf16.mxu0 %v362_v2 }
  0x1c   :  { %322 = vmatpush3.bf16.xpose.msk.msra.mxu0 %vm399_vm1, %v320_v14 }
  0x1d   :  { %323 = vmatprep.subr.bf16.mxu0 %v362_v2 }
  0x24   :  { %326 = vmatpush3.bf16.xpose.msk.msra.mxu0 %vm399_vm1, %v324_v17 }
  0x25   :  { %327 = vmatprep.subr.bf16.mxu0 %v362_v2 }
  0x2c   :  { %330 = vmatpush3.bf16.xpose.msk.msra.mxu0 %vm399_vm1, %v328_v20 }
  0x2d   :  { %331 = vmatprep.subr.bf16.mxu0 %v362_v2 }
  0x34   :  { %334 = vmatpush3.bf16.xpose.msk.msra.mxu0 %vm399_vm1, %v332_v23 }
  0x35   :  { %335 = vmatprep.subr.bf16.mxu0 %v362_v2 }
  0x3c   :  { %338 = vmatpush3.bf16.xpose.msk.msra.mxu0 %vm399_vm1, %v336_v26 }
  0x43   :  { %305 = vmatmul.mubr.msk.f32.vlgmr.msra.gmra.mrb[0].mxu0 %vm48_vm0, %v24_v27 }
 0x116   :  { %v166_v29 = vpop.f32.mrb[0].mxu0 }
 0x117   :  { %v167_v30 = vadd.f32 %v237_v28, %v166_v29  ;;  %v306_v31 = vpop.f32.mrb[1].mxu0 }
 0x119   :  { %v171_v32 = vsub.f32 0.0, %v167_v30  ;;  %v192_v53 = vmul.f32 %v191_v47, %v167_v30 }
 0x11b   :  { %v173_v33 = vsub.f32 0.0, %v171_v32  ;;  %v172_v50 = vmax.f32 %v171_v32, 0.0 }
 0x11d   :  { %v176_v34 = vand.u32 2147483647, %v173_v33  ;;  %vm174_vm6 = vcmp.ne.f32.partialorder %v173_v33, %v173_v33 }
 0x11f   :  { %v177_v35 = vsub.f32 0.0, %v176_v34 }
 0x121   :  { %v178_v36 = vmul.f32 1.442695, %v177_v35 }
 0x123   :  { %346 = vpow2.f32 %v178_v36 }
 0x12d   :  { %v347_v37 = vpop.eup %346 }
 0x12e   :  { %v180_v38 = vadd.f32 1.0, %v347_v37  ;;  %v183_v39 = vmul.f32 -0.5, %v347_v37  ;;  %v186_v43 = vand.u32 2147483647, %v347_v37 }
 0x130   :  { %348 = vlog2.f32 %v180_v38  ;;  %v184_v41 = vadd.f32 1.0, %v183_v39  ;;  %vm187_vm3 = vcmp.lt.f32.partialorder %v186_v43, 0.0004427343 }
 0x132   :  { %v185_v49 = vmul.f32 %v347_v37, %v184_v41 }
 0x13a   :  { %v349_v46 = vpop.eup %348 }
 0x13b   :  { %v182_v48 = vmul.f32 0.6931472, %v349_v46 }
 0x13d   :  { %v188_v51 = vsel %vm187_vm3, %v185_v49, %v182_v48 }
 0x13e   :  { %v189_v52 = vadd.f32 %v188_v51, %v172_v50 }
 0x140   :  { %v190_v54 = vsel %vm174_vm6, %v171_v32, %v189_v52 }
 0x141   :  { %v193_v55 = vadd.f32 %v192_v53, %v190_v54 }
 0x143   :  { %v205_v56 = vsel %vm203_vm7, %v193_v55, 0.0 }
 0x144   :  { %206 = vadd.xlane.f32.xlu0 %v205_v56 }
 0x1d1   :  { %v207_v57 = vpop.xlane.xlu0 %206 }
 0x1d2   :  { %v208_v58 = vrot.slane %v207_v57, 4 }
 0x1d4   :  { %v209_v59 = vadd.f32 %v208_v58, %v207_v57 }
 0x1d6   :  { %v210_v60 = vrot.slane %v209_v59, 2 }
 0x1d8   :  { %v211_v61 = vadd.f32 %v210_v60, %v209_v59 }
 0x1da   :  { %v212_v62 = vrot.slane %v211_v61, 1 }
 0x1dc   :  { %v213_v63 = vadd.f32 %v212_v62, %v211_v61 }
 0x1de   :  { %339 = vpush %v213_v63 }
 0x20f   :  { %s340_s2 = spop %339 }
 0x210   :  { %s222_s3 = smul.f32 0.0625, %s340_s2 }
 0x212   :  { %223 = sst [smem:[#allocation2]] %s222_s3 }
 0x213   :  { %359 = shalt.err (!%p356_p2)
}
 0x214   :  { %s365_s6 = smov [#allocation2]  }
 0x215   :  { %231 = dma.smem_to_hbm %s365_s6, 16, %s487_s4, [#allocation3]  }
 0x216   :  { %360 = dma.done.wait [#allocation3], 16  }
 0x217   :  { %361 = vsyncadd [#allocation3], 4294967280 }
 0x218   :  { %235 = sfence }
 0x219   :  { %236 = vsyncpa [#allocation3], 1 }

</bundles_post_ra>
